<compile_context>
chip_gen: v7x
topology: tpu7x:2x2x1
jax: 0.10.0
libtpu: 0.0.40
codegen_flags: <defaults>
</compile_context>

<pallas_src>
import jax
import jax.numpy as jnp
from jax.experimental import pallas as pl
from jax.experimental.pallas import tpu as pltpu


def _round_up(x, m):
    return (x + m - 1) // m * m


def _vmem_capacity_bytes():
    """Per-core VMEM capacity; conservative fallback if the query is unavailable."""
    try:
        return int(pltpu.get_tpu_info().vmem_capacity_bytes)
    except Exception:
        return 64 << 20  # v7x per-TensorCore size: a valid lower bound everywhere


def _vmem_estimate(E, tm, th, n_k, cbytes, obytes, wbufs):
    """VMEM bytes: double-buffered x/out tiles, optional f32 accumulator,
    weight+bias tiles with `wbufs` buffers each."""
    acc = tm * E * 4 if n_k > 1 else 0
    return (2 * tm * E * cbytes          # x tiles
            + 2 * tm * E * obytes        # out tiles
            + acc                        # accumulator scratch (split path only)
            + wbufs * (2 * E * th * cbytes + (th + E) * 4))  # w1+w2 tiles, biases


def _plan_hidden(E, Hp, tm, cbytes, obytes, budget, allow_single_buffer):
    """Pick the hidden-dim tile.  Goal: keep w1/w2 fully resident (single k step)
    so the weights are read from HBM exactly once per call; only fall back to
    splitting (which re-streams the weights once per row tile) if they cannot fit."""
    if _vmem_estimate(E, tm, Hp, 1, cbytes, obytes, 2) <= budget:
        return Hp, False                     # resident, default double-buffering
    if allow_single_buffer and _vmem_estimate(E, tm, Hp, 1, cbytes, obytes, 1) <= budget:
        return Hp, True                      # resident via pl.Buffered(1) weights
    # Fallback: split the hidden dim; prefer 256-aligned tiles (MXU-friendly).
    cands = sorted((d for d in range(128, Hp, 128) if Hp % d == 0), reverse=True)
    for align in (256, 128):
        for d in cands:
            if d % align == 0 and _vmem_estimate(E, tm, d, Hp // d, cbytes, obytes, 2) <= budget:
                return d, False
    return 128, False


# --------------------------- kernels ---------------------------------------

def _ffn_kernel_resident(x_ref, w1_ref, b1_ref, w2_ref, b2_ref, o_ref):
    # Whole hidden dim resident: single matmul pair, no accumulator scratch.
    h = jnp.dot(x_ref[...], w1_ref[...], preferred_element_type=jnp.float32)
    h = jnp.maximum(h + b1_ref[...], 0.0)          # fc1 bias + ReLU in f32
    # dropout (eval mode): identity
    o_ref[...] = (jnp.dot(h.astype(w2_ref.dtype), w2_ref[...],
                          preferred_element_type=jnp.float32)
                  + b2_ref[...]).astype(o_ref.dtype)


def _ffn_kernel_split(x_ref, w1_ref, b1_ref, w2_ref, b2_ref, o_ref, acc_ref):
    # Hidden dim split across grid axis 1 ("arbitrary"); f32 accumulator scratch.
    k = pl.program_id(1)

    @pl.when(k == 0)
    def _():
        acc_ref[...] = jnp.zeros_like(acc_ref)

    h = jnp.dot(x_ref[...], w1_ref[...], preferred_element_type=jnp.float32)
    h = jnp.maximum(h + b1_ref[...], 0.0)
    # dropout (eval mode): identity
    acc_ref[...] += jnp.dot(h.astype(w2_ref.dtype), w2_ref[...],
                            preferred_element_type=jnp.float32)

    @pl.when(k == pl.num_programs(1) - 1)
    def _():
        o_ref[...] = (acc_ref[...] + b2_ref[...]).astype(o_ref.dtype)


# --------------------------- parameters (setup-time) ------------------------

class FFNParams:
    """Pre-padded / pre-cast FeedForward parameters (built ONCE at model setup)."""

    def __init__(self, w1, b1, w2, b2, E, H, Hp, compute_dtype):
        self.w1, self.b1, self.w2, self.b2 = w1, b1, w2, b2
        self.E, self.H, self.Hp = E, H, Hp
        self.compute_dtype = compute_dtype


def prepare_ffn_params(w1, b1, w2, b2, compute_dtype=jnp.bfloat16):
    """w1: (E, H), b1: (H,), w2: (H, E), b2: (E,).  Pads H up to a lane multiple
    and casts the matmul inputs to compute_dtype once; per-call work is only on x.
    Padded hidden units are exact no-ops (zero bias + ReLU -> 0, zero w2 rows)."""
    E, H = w1.shape
    assert w2.shape == (H, E) and b1.shape == (H,) and b2.shape == (E,)
    assert E % 128 == 0, "embed_dim must be a multiple of 128 (lane width)"
    Hp = _round_up(H, 128)
    if Hp != H:
        w1 = jnp.pad(w1, ((0, 0), (0, Hp - H)))
        b1 = jnp.pad(b1, ((0, Hp - H),))
        w2 = jnp.pad(w2, ((0, Hp - H), (0, 0)))
    return FFNParams(
        w1=jnp.asarray(w1, compute_dtype),
        b1=jnp.asarray(b1, jnp.float32).reshape(1, Hp),
        w2=jnp.asarray(w2, compute_dtype),
        b2=jnp.asarray(b2, jnp.float32).reshape(1, E),
        E=E, H=H, Hp=Hp, compute_dtype=jnp.dtype(compute_dtype))


# --------------------------- pallas_call wrapper -----------------------------

def _ffn_pallas_call(x2, p, *, tm, th, out_dtype, single_buffer, vmem_limit):
    Mp, E = x2.shape
    Hp = p.Hp
    n_k = Hp // th

    def wspec(shape, index_map):
        if single_buffer:
            # Constant block index -> a second buffer would never be filled;
            # single-buffering halves resident-weight VMEM (matters on v7x).
            return pl.BlockSpec(shape, index_map, pipeline_mode=pl.Buffered(1))
        return pl.BlockSpec(shape, index_map)

    if n_k == 1:
        grid = (Mp // tm,)
        in_specs = [
            pl.BlockSpec((tm, E), lambda i: (i, 0)),       # x row tile
            wspec((E, Hp), lambda i: (0, 0)),              # w1 (resident)
            wspec((1, Hp), lambda i: (0, 0)),              # b1
            wspec((Hp, E), lambda i: (0, 0)),              # w2 (resident)
            wspec((1, E), lambda i: (0, 0)),               # b2
        ]
        out_specs = pl.BlockSpec((tm, E), lambda i: (i, 0))
        scratch = []
        kernel = _ffn_kernel_resident
        dim_sem = ("parallel",)
    else:
        grid = (Mp // tm, n_k)
        in_specs = [
            pl.BlockSpec((tm, E), lambda i, k: (i, 0)),    # x row tile
            pl.BlockSpec((E, th), lambda i, k: (0, k)),    # w1 tile
            pl.BlockSpec((1, th), lambda i, k: (0, k)),    # b1 tile
            pl.BlockSpec((th, E), lambda i, k: (k, 0)),    # w2 tile
            pl.BlockSpec((1, E), lambda i, k: (0, 0)),     # b2
        ]
        out_specs = pl.BlockSpec((tm, E), lambda i, k: (i, 0))
        scratch = [pltpu.VMEM((tm, E), jnp.float32)]
        kernel = _ffn_kernel_split
        dim_sem = ("parallel", "arbitrary")

    return pl.pallas_call(
        kernel,
        out_shape=jax.ShapeDtypeStruct((Mp, E), out_dtype),
        grid_spec=pltpu.PrefetchScalarGridSpec(
            num_scalar_prefetch=0,
            grid=grid,
            in_specs=in_specs,
            out_specs=out_specs,
            scratch_shapes=scratch,
        ),
        compiler_params=pltpu.CompilerParams(
            dimension_semantics=dim_sem,
            vmem_limit_bytes=vmem_limit),
    )(x2, p.w1, p.b1, p.w2, p.b2)


def feedforward(x, params, *, tm=None, th=None, out_dtype=None):
    """x: (B, S, E) activations.  params: FFNParams from prepare_ffn_params()."""
    B, S, E = x.shape
    assert E == params.E
    M = B * S
    Hp = params.Hp
    cdt = params.compute_dtype
    cbytes = jnp.dtype(cdt).itemsize
    odt = jnp.dtype(out_dtype) if out_dtype is not None else jnp.dtype(x.dtype)
    obytes = odt.itemsize
    row_align = 16 if cbytes < 4 else 8

    # Per-generation VMEM budget: ~85% of per-core capacity leaves headroom for
    # Mosaic internal scratch (~108 MiB on v5e/v6e, ~54 MiB per TC on v7x).
    budget = (_vmem_capacity_bytes() * 85) // 100

    # Row (token) tile: big tiles raise arithmetic intensity (flops per weight
    # byte) and cut per-grid-step overhead. 512 is a multiple of 256 (v6e/v7x
    # MXU) and of 128 (v5e MXU).
    if tm is None:
        mp = _round_up(M, row_align)
        tm = mp if mp <= 512 else 512
    Mp = _round_up(M, tm)

    single_buffer = False
    if th is None:
        th, single_buffer = _plan_hidden(E, Hp, tm, cbytes, obytes, budget,
                                         allow_single_buffer=True)
    assert Hp % th == 0 and th % 128 == 0
    n_k = Hp // th

    # vmem limit derived from the same model used for the tiling decision.
    wbufs = 1 if single_buffer else 2
    est = _vmem_estimate(E, tm, th, n_k, cbytes, obytes, wbufs)
    vmem_limit = int(min(budget, max(est + (4 << 20), 32 << 20)))

    # Per-call work on the activations only (weights were prepared once).
    x2 = x.reshape(M, E)
    if Mp != M:
        x2 = jnp.pad(x2, ((0, Mp - M), (0, 0)))
    x2 = x2.astype(cdt)

    try:
        out = _ffn_pallas_call(x2, params, tm=tm, th=th, out_dtype=odt,
                               single_buffer=single_buffer, vmem_limit=vmem_limit)
    except Exception:
        if not single_buffer:
            raise
        # pl.Buffered(1) unsupported on this jax/libtpu: re-plan without it
        # (falls back to a split hidden dim with double-buffered weight tiles).
        th, _ = _plan_hidden(E, Hp, tm, cbytes, obytes, budget,
                             allow_single_buffer=False)
        n_k = Hp // th
        est = _vmem_estimate(E, tm, th, n_k, cbytes, obytes, 2)
        vmem_limit = int(min(budget, max(est + (4 << 20), 32 << 20)))
        out = _ffn_pallas_call(x2, params, tm=tm, th=th, out_dtype=odt,
                               single_buffer=False, vmem_limit=vmem_limit)

    return out[:M].reshape(B, S, E)


# --------------------------- reference + test --------------------------------

def reference(x, w1, b1, w2, b2):
    # highest-precision matmuls so the reference itself is not bf16-truncated.
    h = jnp.maximum(jnp.dot(x, w1, precision="highest") + b1, 0.0)
    return jnp.dot(h, w2, precision="highest") + b2


if __name__ == "__main__":
    embed_dim = 128            # ViT spec: embed_dim = 128
    hidden_dim = 32            # ViT spec: hidden_dim = 32
    batch, seq = 2, 65         # 65 tokens = (32/4)^2 patches + 1 cls token

    key = jax.random.PRNGKey(0)
    kx, kw1, kb1, kw2, kb2 = jax.random.split(key, 5)

    x = jax.random.normal(kx, (batch, seq, embed_dim), dtype=jnp.float32)

    # PyTorch Linear stores weight as (out, in); keep the math x @ W + b by
    # sampling the transposed (in, out) form directly.
    bound1 = 1.0 / (embed_dim ** 0.5)
    w1 = jax.random.uniform(kw1, (embed_dim, hidden_dim), jnp.float32, -bound1, bound1)
    b1 = jax.random.uniform(kb1, (hidden_dim,), jnp.float32, -bound1, bound1)
    bound2 = 1.0 / (hidden_dim ** 0.5)
    w2 = jax.random.uniform(kw2, (hidden_dim, embed_dim), jnp.float32, -bound2, bound2)
    b2 = jax.random.uniform(kb2, (embed_dim,), jnp.float32, -bound2, bound2)

    ref = reference(x, w1, b1, w2, b2)

    # Tolerances are sized for TPU matmul precision modes (kernel and XLA
    # reference may decompose f32 matmuls differently); structural bugs would
    # produce errors orders of magnitude larger.

    # 1) f32 compute path (resident weights, single grid axis).
    p_f32 = prepare_ffn_params(w1, b1, w2, b2, compute_dtype=jnp.float32)
    out_f32 = jax.block_until_ready(feedforward(x, p_f32))
    assert out_f32.shape == (batch, seq, embed_dim)
    assert jnp.allclose(out_f32, ref, atol=1e-2, rtol=1e-2), "f32 path mismatch"

    # 2) production path: bf16 MXU inputs, f32 accumulation (prepare once, reuse).
    p_bf16 = prepare_ffn_params(w1, b1, w2, b2)          # compute_dtype=bf16 default
    out_bf16 = jax.block_until_ready(feedforward(x, p_bf16))
    assert out_bf16.shape == (batch, seq, embed_dim)
    assert jnp.allclose(out_bf16, ref, atol=3e-2, rtol=3e-2), "bf16 path mismatch"

    # 3) split hidden-dim path (f32 accumulator scratch) with a wider MLP and a
    #    forced hidden tile, to exercise the multi-k kernel.
    hidden_big = 512
    kw3, kb3, kw4, kb4 = jax.random.split(jax.random.PRNGKey(1), 4)
    w1b = jax.random.uniform(kw3, (embed_dim, hidden_big), jnp.float32, -bound1, bound1)
    b1b = jax.random.uniform(kb3, (hidden_big,), jnp.float32, -bound1, bound1)
    bound2b = 1.0 / (hidden_big ** 0.5)
    w2b = jax.random.uniform(kw4, (hidden_big, embed_dim), jnp.float32, -bound2b, bound2b)
    b2b = jax.random.uniform(kb4, (embed_dim,), jnp.float32, -bound2b, bound2b)
    ref_b = reference(x, w1b, b1b, w2b, b2b)
    p_big = prepare_ffn_params(w1b, b1b, w2b, b2b, compute_dtype=jnp.float32)
    out_b = jax.block_until_ready(feedforward(x, p_big, th=128))
    assert out_b.shape == (batch, seq, embed_dim)
    assert jnp.allclose(out_b, ref_b, atol=1e-2, rtol=1e-2), "split-path mismatch"

    print("KERNEL_OK")
</pallas_src>

<mosaic_0001>
module attributes {stable_mosaic.version = 11 : i64} {
  func.func @_ffn_kernel_resident(%arg0: i32, %arg1: memref<136x128xf32, #tpu.memory_space<vmem>>, %arg2: memref<128x128xf32, #tpu.memory_space<vmem>>, %arg3: memref<1x128xf32, #tpu.memory_space<vmem>>, %arg4: memref<128x128xf32, #tpu.memory_space<vmem>>, %arg5: memref<1x128xf32, #tpu.memory_space<vmem>>, %arg6: memref<136x128xf32, #tpu.memory_space<vmem>>) attributes {dimension_semantics = [#tpu.dimension_semantics<parallel>], iteration_bounds = array<i64: 1>, scalar_prefetch = 0 : i64, scratch_operands = 0 : i64, tpu.core_type = #tpu.core_type<tc>, window_params = [{transform_indices = @transform_0, window_bounds = array<i64: 136, 128>}, {pipeline_mode = #tpu.pipeline_mode<synchronous>, transform_indices = @transform_1, window_bounds = array<i64: 128, 128>}, {pipeline_mode = #tpu.pipeline_mode<synchronous>, transform_indices = @transform_2, window_bounds = array<i64: 1, 128>}, {pipeline_mode = #tpu.pipeline_mode<synchronous>, transform_indices = @transform_3, window_bounds = array<i64: 128, 128>}, {pipeline_mode = #tpu.pipeline_mode<synchronous>, transform_indices = @transform_4, window_bounds = array<i64: 1, 128>}, {transform_indices = @transform_5, window_bounds = array<i64: 136, 128>}]} {
    %c0 = arith.constant 0 : index
    %c0_0 = arith.constant 0 : index
    %0 = vector.load %arg1[%c0, %c0_0] : memref<136x128xf32, #tpu.memory_space<vmem>>, vector<136x128xf32>
    %c0_1 = arith.constant 0 : index
    %c0_2 = arith.constant 0 : index
    %1 = vector.load %arg2[%c0_1, %c0_2] : memref<128x128xf32, #tpu.memory_space<vmem>>, vector<128x128xf32>
    %cst = arith.constant dense<0.000000e+00> : vector<136x128xf32>
    %2 = tpu.matmul %0, %1, %cst {dimension_numbers = #tpu.dot_dimension_numbers<[1], [0], [0], [1], [0, 0, 1, 1], [], []>} : vector<136x128xf32>, vector<128x128xf32>, vector<136x128xf32> -> vector<136x128xf32>
    %c0_3 = arith.constant 0 : index
    %c0_4 = arith.constant 0 : index
    %3 = vector.load %arg3[%c0_3, %c0_4] : memref<1x128xf32, #tpu.memory_space<vmem>>, vector<1x128xf32>
    %4 = vector.broadcast %3 : vector<1x128xf32> to vector<136x128xf32>
    %5 = arith.addf %2, %4 : vector<136x128xf32>
    %cst_5 = arith.constant 0.000000e+00 : f32
    %6 = vector.broadcast %cst_5 : f32 to vector<136x128xf32>
    %7 = arith.maximumf %5, %6 : vector<136x128xf32>
    %c0_6 = arith.constant 0 : index
    %c0_7 = arith.constant 0 : index
    %8 = vector.load %arg4[%c0_6, %c0_7] : memref<128x128xf32, #tpu.memory_space<vmem>>, vector<128x128xf32>
    %cst_8 = arith.constant dense<0.000000e+00> : vector<136x128xf32>
    %9 = tpu.matmul %7, %8, %cst_8 {dimension_numbers = #tpu.dot_dimension_numbers<[1], [0], [0], [1], [0, 0, 1, 1], [], []>} : vector<136x128xf32>, vector<128x128xf32>, vector<136x128xf32> -> vector<136x128xf32>
    %c0_9 = arith.constant 0 : index
    %c0_10 = arith.constant 0 : index
    %10 = vector.load %arg5[%c0_9, %c0_10] : memref<1x128xf32, #tpu.memory_space<vmem>>, vector<1x128xf32>
    %11 = vector.broadcast %10 : vector<1x128xf32> to vector<136x128xf32>
    %12 = arith.addf %9, %11 : vector<136x128xf32>
    %c0_11 = arith.constant 0 : index
    %c0_12 = arith.constant 0 : index
    %13 = vector.load %arg6[%c0_11, %c0_12] : memref<136x128xf32, #tpu.memory_space<vmem>>, vector<136x128xf32>
    tpu.vector_store %arg6[%c0_11, %c0_12], %12 {strides = array<i32>} : memref<136x128xf32, #tpu.memory_space<vmem>>, vector<136x128xf32>,
    return
  }
  func.func @transform_0(%arg0: i32) -> (i32, i32) {
    %c0_i32 = arith.constant 0 : i32
    %c0_i32_0 = arith.constant 0 : i32
    return %arg0, %c0_i32 : i32, i32
  }
  func.func @transform_1(%arg0: i32) -> (i32, i32) {
    %c0_i32 = arith.constant 0 : i32
    %c0_i32_0 = arith.constant 0 : i32
    %c0_i32_1 = arith.constant 0 : i32
    return %c0_i32, %c0_i32_0 : i32, i32
  }
  func.func @transform_2(%arg0: i32) -> (i32, i32) {
    %c0_i32 = arith.constant 0 : i32
    %c0_i32_0 = arith.constant 0 : i32
    %c0_i32_1 = arith.constant 0 : i32
    return %c0_i32, %c0_i32_0 : i32, i32
  }
  func.func @transform_3(%arg0: i32) -> (i32, i32) {
    %c0_i32 = arith.constant 0 : i32
    %c0_i32_0 = arith.constant 0 : i32
    %c0_i32_1 = arith.constant 0 : i32
    return %c0_i32, %c0_i32_0 : i32, i32
  }
  func.func @transform_4(%arg0: i32) -> (i32, i32) {
    %c0_i32 = arith.constant 0 : i32
    %c0_i32_0 = arith.constant 0 : i32
    %c0_i32_1 = arith.constant 0 : i32
    return %c0_i32, %c0_i32_0 : i32, i32
  }
  func.func @transform_5(%arg0: i32) -> (i32, i32) {
    %c0_i32 = arith.constant 0 : i32
    %c0_i32_0 = arith.constant 0 : i32
    return %arg0, %c0_i32 : i32, i32
  }
}

</mosaic_0001>

<bundles_post_ra>
// kernel: tpu_custom_call.1
= control target key start
LH: loop header
LB: loop body
LE: loop exit
PB: predicated region body
PF: predicated region fallthrough
CT: control target
= control target key end

     0   :  { %10 = vsyncpa [#allocation3], 0  ;;  %s1096_s0 = inlined_call_operand.hbm [shape: f32[136,128], index: 0, kind: input, shape index: {}]   ;;  %s1097_s1 = inlined_call_operand.hbm [shape: f32[128,128], index: 1, kind: input, shape index: {}]   ;;  %s1098_s2 = inlined_call_operand.vmem [shape: f32[1,128], index: 2, kind: input, shape index: {}]   ;;  %s1099_s3 = inlined_call_operand.hbm [shape: f32[128,128], index: 3, kind: input, shape index: {}]   ;;  %s1100_s4 = inlined_call_operand.vmem [shape: f32[1,128], index: 4, kind: input, shape index: {}]   ;;  %s1101_s5 = inlined_call_operand.hbm [shape: f32[136,128], index: 5, kind: output, shape index: {}]  }
   0x1   :  { %11 = vsyncpa [#allocation6], 0 }
   0x2   :  { %12 = vsyncpa [#allocation4], 0  ;;  %s862_s18 = smov [#allocation5]   ;;  %s863_s20 = smov [#allocation2]  }
   0x3   :  { %s30_s19 = sshll.u32 %s862_s18, 4  ;;  %s18_s21 = sshll.u32 %s863_s20, 4  ;;  %s31_s19 = int_to_ptr.vmem [resolvable:$true] %s30_s19  ;;  %s901_s21 = int_to_ptr.vmem [resolvable:$true] %s18_s21 }
   0x4   :  { %s768_s24 = scalar_lea.hbm %s1097_s1, 2048 }
   0x5   :  { %p769_p0 = scmp.ne.s32.totalorder %s1097_s1, %s768_s24  ;;  %p772_p1 = scmp.lt.u32.totalorder %s768_s24, %s1097_s1 }
   0x7   :  { %p774_p2 = pnand %p772_p1, %p769_p0 }
   0x9   :  { %777 = shalt.err (!%p774_p2)
}
   0xa   :  { %s778_s29 = scalar_lea.vmem %s31_s19, 2048  ;;  %p783_p4 = scmp.lt.s32.totalorder %s31_s19, %s31_s19 }
   0xb   :  { %p779_p3 = scmp.ne.s32.totalorder %s31_s19, %s778_s29  ;;  %p784_p5 = scmp.lt.s32.totalorder %s778_s29, %s778_s29 }
   0xd   :  { %p785_p6 = por %p784_p5, %p783_p4 }
   0xf   :  { %p786_p7 = pnand %p785_p6, %p779_p3 }
  0x11   :  { %789 = shalt.err (!%p786_p7)
}
  0x12   :  { %s864_s30 = smov 128   ;;  %s865_s6 = smov 8  }
  0x13   :  { %36 = dma.hbm_to_vmem [thread:$0]  %s1097_s1, 2048, %s31_s19, [#allocation6], %s864_s30, %s864_s30, %s865_s6  }
  0x14   :  { %s790_s11 = scalar_lea.hbm %s1096_s0, 2176 }
  0x15   :  { %p791_p8 = scmp.ne.s32.totalorder %s1096_s0, %s790_s11  ;;  %p794_p9 = scmp.lt.u32.totalorder %s790_s11, %s1096_s0 }
  0x17   :  { %p796_p10 = pnand %p794_p9, %p791_p8 }
  0x19   :  { %799 = shalt.err (!%p796_p10)
}
  0x1a   :  { %s800_s16 = scalar_lea.vmem %s901_s21, 2176  ;;  %p805_p12 = scmp.lt.s32.totalorder %s901_s21, %s901_s21 }
  0x1b   :  { %p801_p11 = scmp.ne.s32.totalorder %s901_s21, %s800_s16  ;;  %p806_p13 = scmp.lt.s32.totalorder %s800_s16, %s800_s16 }
  0x1d   :  { %p807_p0 = por %p806_p13, %p805_p12 }
  0x1f   :  { %p808_p1 = pnand %p807_p0, %p801_p11 }
  0x21   :  { %811 = shalt.err (!%p808_p1)
}
  0x22   :  { %24 = dma.hbm_to_vmem [thread:$0]  %s1096_s0, 2176, %s901_s21, [#allocation3], %s864_s30, %s864_s30, %s865_s6  }
  0x23   :  { %s866_s18 = smov [#allocation7]   ;;  %s812_s23 = scalar_lea.hbm %s1099_s3, 2048 }
  0x24   :  { %s44_s19 = sshll.u32 %s866_s18, 4  ;;  %p813_p2 = scmp.ne.s32.totalorder %s1099_s3, %s812_s23  ;;  %s45_s19 = int_to_ptr.vmem [resolvable:$true] %s44_s19 }
  0x25   :  { %p816_p3 = scmp.lt.u32.totalorder %s812_s23, %s1099_s3 }
  0x27   :  { %p818_p4 = pnand %p816_p3, %p813_p2 }
  0x29   :  { %821 = shalt.err (!%p818_p4)
}
  0x2a   :  { %s822_s28 = scalar_lea.vmem %s45_s19, 2048  ;;  %p827_p6 = scmp.lt.s32.totalorder %s45_s19, %s45_s19 }
  0x2b   :  { %p823_p5 = scmp.ne.s32.totalorder %s45_s19, %s822_s28  ;;  %p828_p7 = scmp.lt.s32.totalorder %s822_s28, %s822_s28 }
  0x2d   :  { %p829_p8 = por %p828_p7, %p827_p6 }
  0x2f   :  { %p830_p9 = pnand %p829_p8, %p823_p5 }
  0x31   :  { %833 = shalt.err (!%p830_p9)
}
  0x32   :  { %50 = dma.hbm_to_vmem [thread:$0]  %s1099_s3, 2048, %s45_s19, [#allocation6], %s864_s30, %s864_s30, %s865_s6  }
  0x33   :  { %856 = dma.done.wait [#allocation3], 2176  }
  0x34   :  { %857 = vsyncadd [#allocation3], 4294965120 }
  0x35   :  { %858 = dma.done.wait [#allocation6], 4096  }
  0x36   :  { %859 = vsyncadd [#allocation6], 4294963200  ;;  %v867_v0 = vmov 0.0|0.0   ;;  %vm868_vm0 = vmmov 0   ;;  %v869_v1 = vmov 0.0   ;;  %v79_v2 = vld [vmem:[#allocation5] sm:$0xff] }
  0x37   :  { %711 = vmatprep.subr.bf16.mxu0 %v867_v0  ;;  %577 = vmatprep.mubr.msk.f32.mxu0 %vm868_vm0, %v869_v1  ;;  %v80_v3 = vld [vmem:[#allocation5 + $0x8] sm:$0xff]  ;;  %v81_v4 = vld [vmem:[#allocation5 + $0x10] sm:$0xff]  ;;  %v82_v6 = vld [vmem:[#allocation5 + $0x18] sm:$0xff] }
  0x38   :  { %735 = vmatprep.subr.bf16.mxu1 %v867_v0  ;;  %660 = vmatprep.mubr.msk.f32.mxu1 %vm868_vm0, %v869_v1  ;;  %v712_v5 = vpack.c.bf16 %v80_v3, %v79_v2  ;;  %v715_v7 = vpack.c.bf16 %v82_v6, %v81_v4  ;;  %v83_v8 = vld [vmem:[#allocation5 + $0x20] sm:$0xff]  ;;  %v84_v9 = vld [vmem:[#allocation5 + $0x28] sm:$0xff]  ;;  %v85_v11 = vld [vmem:[#allocation5 + $0x30] sm:$0xff] }
  0x39   :  { %v718_v10 = vpack.c.bf16 %v84_v9, %v83_v8  ;;  %v86_v12 = vld [vmem:[#allocation5 + $0x38] sm:$0xff]  ;;  %v269_v14 = vld [vmem:[#allocation7] sm:$0xff]  ;;  %v270_v15 = vld [vmem:[#allocation7 + $0x8] sm:$0xff] }
  0x3a   :  { %713 = vmatpush3.bf16.msra.mxu0 %v712_v5  ;;  %v721_v13 = vpack.c.bf16 %v86_v12, %v85_v11  ;;  %v271_v16 = vld [vmem:[#allocation7 + $0x10] sm:$0xff]  ;;  %v87_v17 = vld [vmem:[#allocation5 + $0x40] sm:$0xff]  ;;  %v88_v18 = vld [vmem:[#allocation5 + $0x48] sm:$0xff]  ;;  %v736_v19 = vpack.c.bf16 %v270_v15, %v269_v14 }
  0x3b   :  { %714 = vmatprep.subr.bf16.mxu0 %v867_v0  ;;  %v272_v20 = vld [vmem:[#allocation7 + $0x18] sm:$0xff]  ;;  %v724_v22 = vpack.c.bf16 %v88_v18, %v87_v17  ;;  %v273_v23 = vld [vmem:[#allocation7 + $0x20] sm:$0xff]  ;;  %v274_v24 = vld [vmem:[#allocation7 + $0x28] sm:$0xff] }
  0x3c   :  { %737 = vmatpush3.bf16.msra.mxu1 %v736_v19  ;;  %v739_v21 = vpack.c.bf16 %v272_v20, %v271_v16  ;;  %v89_v25 = vld [vmem:[#allocation5 + $0x50] sm:$0xff]  ;;  %v90_v26 = vld [vmem:[#allocation5 + $0x58] sm:$0xff]  ;;  %v742_v27 = vpack.c.bf16 %v274_v24, %v273_v23  ;;  %v91_v31 = vld [vmem:[#allocation5 + $0x60] sm:$0xff] }
  0x3d   :  { %738 = vmatprep.subr.bf16.mxu1 %v867_v0  ;;  %v727_v28 = vpack.c.bf16 %v90_v26, %v89_v25  ;;  %v275_v29 = vld [vmem:[#allocation7 + $0x30] sm:$0xff]  ;;  %v276_v30 = vld [vmem:[#allocation7 + $0x38] sm:$0xff]  ;;  %v92_v32 = vld [vmem:[#allocation5 + $0x68] sm:$0xff] }
  0x3e   :  { %716 = vmatpush3.bf16.msra.mxu0 %v715_v7  ;;  %v745_v33 = vpack.c.bf16 %v276_v30, %v275_v29  ;;  %v730_v34 = vpack.c.bf16 %v92_v32, %v91_v31  ;;  %v277_v35 = vld [vmem:[#allocation7 + $0x40] sm:$0xff]  ;;  %v278_v36 = vld [vmem:[#allocation7 + $0x48] sm:$0xff]  ;;  %v93_v37 = vld [vmem:[#allocation5 + $0x70] sm:$0xff] }
  0x3f   :  { %717 = vmatprep.subr.bf16.mxu0 %v867_v0  ;;  %v94_v38 = vld [vmem:[#allocation5 + $0x78] sm:$0xff]  ;;  %v748_v39 = vpack.c.bf16 %v278_v36, %v277_v35  ;;  %v279_v41 = vld [vmem:[#allocation7 + $0x50] sm:$0xff]  ;;  %v281_v45 = vld [vmem:[#allocation7 + $0x60] sm:$0xff] }
  0x40   :  { %740 = vmatpush3.bf16.msra.mxu1 %v739_v21  ;;  %v733_v40 = vpack.c.bf16 %v94_v38, %v93_v37  ;;  %v280_v42 = vld [vmem:[#allocation7 + $0x58] sm:$0xff]  ;;  %v282_v46 = vld [vmem:[#allocation7 + $0x68] sm:$0xff]  ;;  %v63_v48 = vld [vmem:[#allocation2 + $0x8] sm:$0xff] }
  0x41   :  { %741 = vmatprep.subr.bf16.mxu1 %v867_v0  ;;  %v751_v43 = vpack.c.bf16 %v280_v42, %v279_v41  ;;  %v62_v44 = vld [vmem:[#allocation2] sm:$0xff]  ;;  %v754_v47 = vpack.c.bf16 %v282_v46, %v281_v45  ;;  %v64_v49 = vld [vmem:[#allocation2 + $0x10] sm:$0xff]  ;;  %v65_v50 = vld [vmem:[#allocation2 + $0x18] sm:$0xff] }
  0x42   :  { %719 = vmatpush3.bf16.msra.mxu0 %v718_v10  ;;  %v66_v51 = vld [vmem:[#allocation2 + $0x20] sm:$0xff]  ;;  %v67_v52 = vld [vmem:[#allocation2 + $0x28] sm:$0xff]  ;;  %v68_v53 = vld [vmem:[#allocation2 + $0x30] sm:$0xff] }
  0x43   :  { %720 = vmatprep.subr.bf16.mxu0 %v867_v0  ;;  %v69_v54 = vld [vmem:[#allocation2 + $0x38] sm:$0xff]  ;;  %v70_v55 = vld [vmem:[#allocation2 + $0x40] sm:$0xff]  ;;  %v71_v56 = vld [vmem:[#allocation2 + $0x48] sm:$0xff] }
  0x44   :  { %743 = vmatpush3.bf16.msra.mxu1 %v742_v27  ;;  %v72_v57 = vld [vmem:[#allocation2 + $0x50] sm:$0xff]  ;;  %v73_v58 = vld [vmem:[#allocation2 + $0x58] sm:$0xff]  ;;  %v74_v59 = vld [vmem:[#allocation2 + $0x60] sm:$0xff] }
  0x45   :  { %744 = vmatprep.subr.bf16.mxu1 %v867_v0  ;;  %v75_v60 = vld [vmem:[#allocation2 + $0x68] sm:$0xff]  ;;  %v76_v61 = vld [vmem:[#allocation2 + $0x70] sm:$0xff]  ;;  %v77_v62 = vld [vmem:[#allocation2 + $0x78] sm:$0xff] }
  0x46   :  { %722 = vmatpush3.bf16.msra.mxu0 %v721_v13  ;;  %v78_v63 = vld [vmem:[#allocation2 + $0x80] sm:$0xff] }
  0x47   :  { %723 = vmatprep.subr.bf16.mxu0 %v867_v0  ;;  %v284_v2 = vld [vmem:[#allocation7 + $0x78] sm:$0xff] }
  0x48   :  { %746 = vmatpush3.bf16.msra.mxu1 %v745_v33  ;;  %v1008_v4 = vld [vmem:[%s1098_s2] ss:$0 sm:$0xff] }
  0x49   :  { %747 = vmatprep.subr.bf16.mxu1 %v867_v0 }
  0x4a   :  { %725 = vmatpush3.bf16.msra.mxu0 %v724_v22 }
  0x4b   :  { %726 = vmatprep.subr.bf16.mxu0 %v867_v0 }
  0x4c   :  { %749 = vmatpush3.bf16.msra.mxu1 %v748_v39 }
  0x4d   :  { %750 = vmatprep.subr.bf16.mxu1 %v867_v0 }
  0x4e   :  { %728 = vmatpush3.bf16.msra.mxu0 %v727_v28 }
  0x4f   :  { %729 = vmatprep.subr.bf16.mxu0 %v867_v0 }
  0x50   :  { %752 = vmatpush3.bf16.msra.mxu1 %v751_v43 }
  0x51   :  { %753 = vmatprep.subr.bf16.mxu1 %v867_v0 }
  0x52   :  { %731 = vmatpush3.bf16.msra.mxu0 %v730_v34 }
  0x53   :  { %732 = vmatprep.subr.bf16.mxu0 %v867_v0 }
  0x54   :  { %755 = vmatpush3.bf16.msra.mxu1 %v754_v47 }
  0x55   :  { %756 = vmatprep.subr.bf16.mxu1 %v867_v0  ;;  %v283_v0 = vld [vmem:[#allocation7 + $0x70] sm:$0xff] }
  0x56   :  { %734 = vmatpush3.bf16.msra.mxu0 %v733_v40  ;;  %v757_v3 = vpack.c.bf16 %v284_v2, %v283_v0 }
  0x58   :  { %758 = vmatpush3.bf16.msra.mxu1 %v757_v3 }
  0x59   :  { %578 = vmatmul.mubr.f32.vlgmr.msra.gmra.mrb[0].mxu0 %v62_v44 }
  0x5a   :  { %580 = vmatprep.mubr.msk.f32.mxu0 %vm868_vm0, %v869_v1 }
  0x5d   :  { %581 = vmatmul.mubr.f32.gmra.mrb[2].mxu0 %v63_v48 }
  0x5e   :  { %583 = vmatprep.mubr.msk.f32.mxu0 %vm868_vm0, %v869_v1 }
  0x61   :  { %584 = vmatmul.mubr.f32.gmra.mrb[4].mxu0 %v64_v49 }
  0x62   :  { %586 = vmatprep.mubr.msk.f32.mxu0 %vm868_vm0, %v869_v1 }
  0x65   :  { %587 = vmatmul.mubr.f32.gmra.mrb[6].mxu0 %v65_v50 }
  0x66   :  { %589 = vmatprep.mubr.msk.f32.mxu0 %vm868_vm0, %v869_v1 }
  0x69   :  { %590 = vmatmul.mubr.f32.gmra.mrb[8].mxu0 %v66_v51 }
  0x6a   :  { %592 = vmatprep.mubr.msk.f32.mxu0 %vm868_vm0, %v869_v1 }
  0x6d   :  { %593 = vmatmul.mubr.f32.gmra.mrb[10].mxu0 %v67_v52 }
  0x6e   :  { %595 = vmatprep.mubr.msk.f32.mxu0 %vm868_vm0, %v869_v1 }
  0x71   :  { %596 = vmatmul.mubr.f32.gmra.mrb[12].mxu0 %v68_v53 }
  0x72   :  { %598 = vmatprep.mubr.msk.f32.mxu0 %vm868_vm0, %v869_v1 }
  0x75   :  { %599 = vmatmul.mubr.f32.gmra.mrb[14].mxu0 %v69_v54 }
  0x76   :  { %601 = vmatprep.mubr.msk.f32.mxu0 %vm868_vm0, %v869_v1 }
  0x79   :  { %602 = vmatmul.mubr.f32.gmra.mrb[16].mxu0 %v70_v55 }
  0x7a   :  { %604 = vmatprep.mubr.msk.f32.mxu0 %vm868_vm0, %v869_v1 }
  0x7d   :  { %605 = vmatmul.mubr.f32.gmra.mrb[18].mxu0 %v71_v56 }
  0x7e   :  { %607 = vmatprep.mubr.msk.f32.mxu0 %vm868_vm0, %v869_v1 }
  0x81   :  { %608 = vmatmul.mubr.f32.gmra.mrb[20].mxu0 %v72_v57 }
  0x82   :  { %610 = vmatprep.mubr.msk.f32.mxu0 %vm868_vm0, %v869_v1 }
  0x85   :  { %611 = vmatmul.mubr.f32.gmra.mrb[22].mxu0 %v73_v58 }
  0x86   :  { %613 = vmatprep.mubr.msk.f32.mxu0 %vm868_vm0, %v869_v1 }
  0x89   :  { %614 = vmatmul.mubr.f32.gmra.mrb[24].mxu0 %v74_v59 }
  0x8a   :  { %616 = vmatprep.mubr.msk.f32.mxu0 %vm868_vm0, %v869_v1 }
  0x8d   :  { %617 = vmatmul.mubr.f32.gmra.mrb[26].mxu0 %v75_v60 }
  0x8e   :  { %619 = vmatprep.mubr.msk.f32.mxu0 %vm868_vm0, %v869_v1 }
  0x91   :  { %620 = vmatmul.mubr.f32.gmra.mrb[28].mxu0 %v76_v61 }
  0x92   :  { %622 = vmatprep.mubr.msk.f32.mxu0 %vm868_vm0, %v869_v1 }
  0x95   :  { %623 = vmatmul.mubr.f32.gmra.mrb[30].mxu0 %v77_v62 }
  0x96   :  { %625 = vmatprep.mubr.msk.f32.mxu0 %vm868_vm0, %v869_v1 }
  0x99   :  { %626 = vmatmul.mubr.f32.gmra.mrb[32].mxu0 %v78_v63 }
 0x12c   :  { %v168_v5 = vpop.f32.mrb[0].mxu0 }
 0x12d   :  { %v169_v6 = vadd.f32 %v1008_v4, %v168_v5  ;;  %v579_v7 = vpop.f32.mrb[1].mxu0 }
 0x12f   :  { %v252_v8 = vmax.f32 %v169_v6, 0.0 }
 0x130   :  { %v173_v9 = vpop.f32.mrb[2].mxu0 }
 0x131   :  { %v174_v10 = vadd.f32 %v1008_v4, %v173_v9  ;;  %v582_v11 = vpop.f32.mrb[3].mxu0  ;;  %661 = vmatmul.mubr.f32.vlgmr.msra.gmra.mrb[0].mxu1 %v252_v8 }
 0x132   :  { %663 = vmatprep.mubr.msk.f32.mxu1 %vm868_vm0, %v869_v1  ;;  %v1062_v11 = vld [vmem:[%s1100_s4] ss:$0 sm:$0xff]  ;;  %s870_s4 = smov [#allocation8]  }
 0x133   :  { %v253_v12 = vmax.f32 %v174_v10, 0.0  ;;  %s464_s8 = sshll.u32 %s870_s4, 4  ;;  %s465_s8 = int_to_ptr.vmem [resolvable:$true] %s464_s8 }
 0x134   :  { %v178_v13 = vpop.f32.mrb[4].mxu0  ;;  %s834_s9 = scalar_lea.vmem %s465_s8, 2176  ;;  %p839_p11 = scmp.lt.s32.totalorder %s465_s8, %s465_s8 }
 0x135   :  { %v179_v14 = vadd.f32 %v1008_v4, %v178_v13  ;;  %v585_v15 = vpop.f32.mrb[5].mxu0  ;;  %664 = vmatmul.mubr.f32.gmra.mrb[2].mxu1 %v253_v12  ;;  %p835_p10 = scmp.ne.s32.totalorder %s465_s8, %s834_s9  ;;  %p840_p12 = scmp.lt.s32.totalorder %s834_s9, %s834_s9 }
 0x136   :  { %666 = vmatprep.mubr.msk.f32.mxu1 %vm868_vm0, %v869_v1 }
 0x137   :  { %v254_v16 = vmax.f32 %v179_v14, 0.0  ;;  %p841_p13 = por %p840_p12, %p839_p11 }
 0x138   :  { %v183_v17 = vpop.f32.mrb[6].mxu0 }
 0x139   :  { %v184_v18 = vadd.f32 %v1008_v4, %v183_v17  ;;  %v588_v19 = vpop.f32.mrb[7].mxu0  ;;  %667 = vmatmul.mubr.f32.gmra.mrb[4].mxu1 %v254_v16  ;;  %p842_p0 = pnand %p841_p13, %p835_p10 }
 0x13a   :  { %669 = vmatprep.mubr.msk.f32.mxu1 %vm868_vm0, %v869_v1 }
 0x13b   :  { %v255_v20 = vmax.f32 %v184_v18, 0.0 }
 0x13c   :  { %v188_v21 = vpop.f32.mrb[8].mxu0 }
 0x13d   :  { %v189_v22 = vadd.f32 %v1008_v4, %v188_v21  ;;  %v591_v23 = vpop.f32.mrb[9].mxu0  ;;  %670 = vmatmul.mubr.f32.gmra.mrb[6].mxu1 %v255_v20 }
 0x13e   :  { %672 = vmatprep.mubr.msk.f32.mxu1 %vm868_vm0, %v869_v1 }
 0x13f   :  { %v256_v24 = vmax.f32 %v189_v22, 0.0 }
 0x140   :  { %v193_v25 = vpop.f32.mrb[10].mxu0 }
 0x141   :  { %v194_v26 = vadd.f32 %v1008_v4, %v193_v25  ;;  %v594_v27 = vpop.f32.mrb[11].mxu0  ;;  %673 = vmatmul.mubr.f32.gmra.mrb[8].mxu1 %v256_v24 }
 0x142   :  { %675 = vmatprep.mubr.msk.f32.mxu1 %vm868_vm0, %v869_v1 }
 0x143   :  { %v257_v28 = vmax.f32 %v194_v26, 0.0 }
 0x144   :  { %v198_v29 = vpop.f32.mrb[12].mxu0 }
 0x145   :  { %v199_v30 = vadd.f32 %v1008_v4, %v198_v29  ;;  %v597_v31 = vpop.f32.mrb[13].mxu0  ;;  %676 = vmatmul.mubr.f32.gmra.mrb[10].mxu1 %v257_v28 }
 0x146   :  { %678 = vmatprep.mubr.msk.f32.mxu1 %vm868_vm0, %v869_v1 }
 0x147   :  { %v258_v32 = vmax.f32 %v199_v30, 0.0 }
 0x148   :  { %v203_v33 = vpop.f32.mrb[14].mxu0 }
 0x149   :  { %v204_v34 = vadd.f32 %v1008_v4, %v203_v33  ;;  %v600_v35 = vpop.f32.mrb[15].mxu0  ;;  %679 = vmatmul.mubr.f32.gmra.mrb[12].mxu1 %v258_v32 }
 0x14a   :  { %681 = vmatprep.mubr.msk.f32.mxu1 %vm868_vm0, %v869_v1 }
 0x14b   :  { %v259_v36 = vmax.f32 %v204_v34, 0.0 }
 0x14c   :  { %v208_v37 = vpop.f32.mrb[16].mxu0 }
 0x14d   :  { %v209_v38 = vadd.f32 %v1008_v4, %v208_v37  ;;  %v603_v39 = vpop.f32.mrb[17].mxu0  ;;  %682 = vmatmul.mubr.f32.gmra.mrb[14].mxu1 %v259_v36 }
 0x14e   :  { %684 = vmatprep.mubr.msk.f32.mxu1 %vm868_vm0, %v869_v1 }
 0x14f   :  { %v260_v40 = vmax.f32 %v209_v38, 0.0 }
 0x150   :  { %v213_v41 = vpop.f32.mrb[18].mxu0 }
 0x151   :  { %v214_v42 = vadd.f32 %v1008_v4, %v213_v41  ;;  %v606_v43 = vpop.f32.mrb[19].mxu0  ;;  %685 = vmatmul.mubr.f32.gmra.mrb[16].mxu1 %v260_v40 }
 0x152   :  { %687 = vmatprep.mubr.msk.f32.mxu1 %vm868_vm0, %v869_v1 }
 0x153   :  { %v261_v44 = vmax.f32 %v214_v42, 0.0 }
 0x154   :  { %v218_v45 = vpop.f32.mrb[20].mxu0 }
 0x155   :  { %v219_v46 = vadd.f32 %v1008_v4, %v218_v45  ;;  %v609_v47 = vpop.f32.mrb[21].mxu0  ;;  %688 = vmatmul.mubr.f32.gmra.mrb[18].mxu1 %v261_v44 }
 0x156   :  { %690 = vmatprep.mubr.msk.f32.mxu1 %vm868_vm0, %v869_v1 }
 0x157   :  { %v262_v48 = vmax.f32 %v219_v46, 0.0 }
 0x158   :  { %v223_v49 = vpop.f32.mrb[22].mxu0 }
 0x159   :  { %v224_v50 = vadd.f32 %v1008_v4, %v223_v49  ;;  %v612_v51 = vpop.f32.mrb[23].mxu0  ;;  %691 = vmatmul.mubr.f32.gmra.mrb[20].mxu1 %v262_v48 }
 0x15a   :  { %693 = vmatprep.mubr.msk.f32.mxu1 %vm868_vm0, %v869_v1 }
 0x15b   :  { %v263_v52 = vmax.f32 %v224_v50, 0.0 }
 0x15c   :  { %v228_v53 = vpop.f32.mrb[24].mxu0 }
 0x15d   :  { %v229_v54 = vadd.f32 %v1008_v4, %v228_v53  ;;  %v615_v55 = vpop.f32.mrb[25].mxu0  ;;  %694 = vmatmul.mubr.f32.gmra.mrb[22].mxu1 %v263_v52 }
 0x15e   :  { %696 = vmatprep.mubr.msk.f32.mxu1 %vm868_vm0, %v869_v1 }
 0x15f   :  { %v264_v56 = vmax.f32 %v229_v54, 0.0 }
 0x160   :  { %v233_v57 = vpop.f32.mrb[26].mxu0 }
 0x161   :  { %v234_v58 = vadd.f32 %v1008_v4, %v233_v57  ;;  %v618_v59 = vpop.f32.mrb[27].mxu0  ;;  %697 = vmatmul.mubr.f32.gmra.mrb[24].mxu1 %v264_v56 }
 0x162   :  { %699 = vmatprep.mubr.msk.f32.mxu1 %vm868_vm0, %v869_v1 }
 0x163   :  { %v265_v60 = vmax.f32 %v234_v58, 0.0 }
 0x164   :  { %v238_v61 = vpop.f32.mrb[28].mxu0 }
 0x165   :  { %v239_v62 = vadd.f32 %v1008_v4, %v238_v61  ;;  %v621_v63 = vpop.f32.mrb[29].mxu0  ;;  %700 = vmatmul.mubr.f32.gmra.mrb[26].mxu1 %v265_v60 }
 0x166   :  { %702 = vmatprep.mubr.msk.f32.mxu1 %vm868_vm0, %v869_v1 }
 0x167   :  { %v266_v0 = vmax.f32 %v239_v62, 0.0 }
 0x168   :  { %v243_v2 = vpop.f32.mrb[30].mxu0 }
 0x169   :  { %v244_v3 = vadd.f32 %v1008_v4, %v243_v2  ;;  %v624_v5 = vpop.f32.mrb[31].mxu0  ;;  %703 = vmatmul.mubr.f32.gmra.mrb[28].mxu1 %v266_v0 }
 0x16a   :  { %705 = vmatprep.mubr.msk.f32.mxu1 %vm868_vm0, %v869_v1 }
 0x16b   :  { %v267_v6 = vmax.f32 %v244_v3, 0.0 }
 0x16c   :  { %v248_v7 = vpop.f32.mrb[32].mxu0 }
 0x16d   :  { %v249_v8 = vadd.f32 %v1008_v4, %v248_v7  ;;  %v627_v9 = vpop.f32.mrb[33].mxu0  ;;  %706 = vmatmul.mubr.f32.gmra.mrb[30].mxu1 %v267_v6 }
 0x16e   :  { %708 = vmatprep.mubr.msk.f32.mxu1 %vm868_vm0, %v869_v1 }
 0x16f   :  { %v268_v10 = vmax.f32 %v249_v8, 0.0 }
 0x171   :  { %709 = vmatmul.mubr.f32.gmra.mrb[32].mxu1 %v268_v10 }
 0x204   :  { %v358_v12 = vpop.f32.mrb[0].mxu1 }
 0x205   :  { %v359_v13 = vadd.f32 %v1062_v11, %v358_v12  ;;  %v662_v14 = vpop.f32.mrb[1].mxu1 }
 0x207   :  { %442 = vst [vmem:[#allocation8] sm:$0xff] %v359_v13 }
 0x208   :  { %v363_v15 = vpop.f32.mrb[2].mxu1 }
 0x209   :  { %v364_v4 = vadd.f32 %v1062_v11, %v363_v15  ;;  %v665_v16 = vpop.f32.mrb[3].mxu1 }
 0x20b   :  { %443 = vst [vmem:[#allocation8 + $0x8] sm:$0xff] %v364_v4 }
 0x20c   :  { %v368_v17 = vpop.f32.mrb[4].mxu1 }
 0x20d   :  { %v369_v1 = vadd.f32 %v1062_v11, %v368_v17  ;;  %v668_v18 = vpop.f32.mrb[5].mxu1 }
 0x20f   :  { %444 = vst [vmem:[#allocation8 + $0x10] sm:$0xff] %v369_v1 }
 0x210   :  { %v373_v19 = vpop.f32.mrb[6].mxu1 }
 0x211   :  { %v374_v20 = vadd.f32 %v1062_v11, %v373_v19  ;;  %v671_v21 = vpop.f32.mrb[7].mxu1 }
 0x213   :  { %445 = vst [vmem:[#allocation8 + $0x18] sm:$0xff] %v374_v20 }
 0x214   :  { %v378_v22 = vpop.f32.mrb[8].mxu1 }
 0x215   :  { %v379_v23 = vadd.f32 %v1062_v11, %v378_v22  ;;  %v674_v24 = vpop.f32.mrb[9].mxu1 }
 0x217   :  { %446 = vst [vmem:[#allocation8 + $0x20] sm:$0xff] %v379_v23 }
 0x218   :  { %v383_v25 = vpop.f32.mrb[10].mxu1 }
 0x219   :  { %v384_v26 = vadd.f32 %v1062_v11, %v383_v25  ;;  %v677_v27 = vpop.f32.mrb[11].mxu1 }
 0x21b   :  { %447 = vst [vmem:[#allocation8 + $0x28] sm:$0xff] %v384_v26 }
 0x21c   :  { %v388_v28 = vpop.f32.mrb[12].mxu1 }
 0x21d   :  { %v389_v29 = vadd.f32 %v1062_v11, %v388_v28  ;;  %v680_v30 = vpop.f32.mrb[13].mxu1 }
 0x21f   :  { %448 = vst [vmem:[#allocation8 + $0x30] sm:$0xff] %v389_v29 }
 0x220   :  { %v393_v31 = vpop.f32.mrb[14].mxu1 }
 0x221   :  { %v394_v32 = vadd.f32 %v1062_v11, %v393_v31  ;;  %v683_v33 = vpop.f32.mrb[15].mxu1 }
 0x223   :  { %449 = vst [vmem:[#allocation8 + $0x38] sm:$0xff] %v394_v32 }
 0x224   :  { %v398_v34 = vpop.f32.mrb[16].mxu1 }
 0x225   :  { %v399_v35 = vadd.f32 %v1062_v11, %v398_v34  ;;  %v686_v36 = vpop.f32.mrb[17].mxu1 }
 0x227   :  { %450 = vst [vmem:[#allocation8 + $0x40] sm:$0xff] %v399_v35 }
 0x228   :  { %v403_v37 = vpop.f32.mrb[18].mxu1 }
 0x229   :  { %v404_v38 = vadd.f32 %v1062_v11, %v403_v37  ;;  %v689_v39 = vpop.f32.mrb[19].mxu1 }
 0x22b   :  { %451 = vst [vmem:[#allocation8 + $0x48] sm:$0xff] %v404_v38 }
 0x22c   :  { %v408_v40 = vpop.f32.mrb[20].mxu1 }
 0x22d   :  { %v409_v41 = vadd.f32 %v1062_v11, %v408_v40  ;;  %v692_v42 = vpop.f32.mrb[21].mxu1 }
 0x22f   :  { %452 = vst [vmem:[#allocation8 + $0x50] sm:$0xff] %v409_v41 }
 0x230   :  { %v413_v43 = vpop.f32.mrb[22].mxu1 }
 0x231   :  { %v414_v44 = vadd.f32 %v1062_v11, %v413_v43  ;;  %v695_v45 = vpop.f32.mrb[23].mxu1 }
 0x233   :  { %453 = vst [vmem:[#allocation8 + $0x58] sm:$0xff] %v414_v44 }
 0x234   :  { %v418_v46 = vpop.f32.mrb[24].mxu1 }
 0x235   :  { %v419_v47 = vadd.f32 %v1062_v11, %v418_v46  ;;  %v698_v48 = vpop.f32.mrb[25].mxu1 }
 0x237   :  { %454 = vst [vmem:[#allocation8 + $0x60] sm:$0xff] %v419_v47 }
 0x238   :  { %v423_v49 = vpop.f32.mrb[26].mxu1 }
 0x239   :  { %v424_v50 = vadd.f32 %v1062_v11, %v423_v49  ;;  %v701_v51 = vpop.f32.mrb[27].mxu1 }
 0x23b   :  { %455 = vst [vmem:[#allocation8 + $0x68] sm:$0xff] %v424_v50 }
 0x23c   :  { %v428_v52 = vpop.f32.mrb[28].mxu1 }
 0x23d   :  { %v429_v53 = vadd.f32 %v1062_v11, %v428_v52  ;;  %v704_v54 = vpop.f32.mrb[29].mxu1 }
 0x23f   :  { %456 = vst [vmem:[#allocation8 + $0x70] sm:$0xff] %v429_v53 }
 0x240   :  { %v433_v55 = vpop.f32.mrb[30].mxu1 }
 0x241   :  { %v434_v56 = vadd.f32 %v1062_v11, %v433_v55  ;;  %v707_v57 = vpop.f32.mrb[31].mxu1 }
 0x243   :  { %457 = vst [vmem:[#allocation8 + $0x78] sm:$0xff] %v434_v56 }
 0x244   :  { %v438_v58 = vpop.f32.mrb[32].mxu1 }
 0x245   :  { %v439_v59 = vadd.f32 %v1062_v11, %v438_v58  ;;  %v710_v60 = vpop.f32.mrb[33].mxu1 }
 0x247   :  { %458 = vst [vmem:[#allocation8 + $0x80] sm:$0xff] %v439_v59 }
 0x248   :  { %845 = shalt.err (!%p842_p0)
}
 0x249   :  { %s846_s12 = scalar_lea.hbm %s1101_s5, 2176 }
 0x24a   :  { %p847_p1 = scmp.ne.s32.totalorder %s1101_s5, %s846_s12  ;;  %p850_p2 = scmp.lt.u32.totalorder %s846_s12, %s1101_s5 }
 0x24c   :  { %p852_p3 = pnand %p850_p2, %p847_p1 }
 0x24e   :  { %855 = shalt.err (!%p852_p3)
}
 0x24f   :  { %470 = dma.vmem_to_hbm [thread:$0]  %s465_s8, 2176, %s1101_s5, [#allocation4], %s864_s30, %s864_s30, %s865_s6  }
 0x250   :  { %860 = dma.done.wait [#allocation4], 2176  }
 0x251   :  { %861 = vsyncadd [#allocation4], 4294965120 }
 0x252   :  { %474 = vsyncpa [#allocation3], 1 }
 0x253   :  { %475 = vsyncpa [#allocation6], 1 }
 0x254   :  { %476 = vsyncpa [#allocation4], 1 }

</bundles_post_ra>
